<compile_context>
chip_gen: v6e
topology: v6e:2x2x1
jax: 0.10.0
libtpu: 0.0.40
codegen_flags: <defaults>
</compile_context>

<pallas_src>
import functools

import jax
import jax.numpy as jnp
from jax.experimental import pallas as pl
from jax.experimental.pallas import tpu as pltpu


def _round_up(x, m):
    return (x + m - 1) // m * m


def _ffnn_kernel(x_ref, w1_ref, b1_ref, w2_ref, b2_ref, w3_ref, b3_ref, o_ref):
    bf16 = jnp.bfloat16
    # x arrives in its original dtype; cast to bf16 on the VPU (free slot).
    x = x_ref[...].astype(bf16)
    # fc1 + relu  (bf16 MXU inputs, f32 accumulation; bias/ReLU in f32)
    h1 = jnp.dot(x, w1_ref[...].astype(bf16), preferred_element_type=jnp.float32)
    h1 = jnp.maximum(h1 + b1_ref[...], 0.0)
    # fc2 + relu
    h2 = jnp.dot(h1.astype(bf16), w2_ref[...].astype(bf16),
                 preferred_element_type=jnp.float32)
    h2 = jnp.maximum(h2 + b2_ref[...], 0.0)
    # fc3 (narrow, unpadded output block)
    logits = jnp.dot(h2.astype(bf16), w3_ref[...].astype(bf16),
                     preferred_element_type=jnp.float32)
    logits = logits + b3_ref[...]
    # softmax over the feature axis, all f32; exact divide (plenty of slack).
    m = jnp.max(logits, axis=-1, keepdims=True)
    e = jnp.exp(logits - m)
    denom = jnp.sum(e, axis=-1, keepdims=True)
    o_ref[...] = (e / denom).astype(o_ref.dtype)


@functools.partial(jax.jit, static_argnames=("batch_tile",))
def ffnn_forward(x, w1, b1, w2, b2, w3, b3, *, batch_tile=2048):
    """Fused FFNN forward.  For very large B, pass a larger batch_tile."""
    assert batch_tile % 8 == 0, "batch_tile must be a multiple of 8 sublanes"
    orig_dtype = x.dtype
    B, in_size = x.shape
    hidden = w1.shape[1]
    out_size = w3.shape[1]

    # --- batch tiling ---------------------------------------------------
    # Keep >=2 grid steps whenever the (8-padded) batch allows it, so v7x's
    # two TensorCores both get work; otherwise use the full batch as 1 tile.
    b8 = _round_up(B, 8)
    two_step_cap = max(8, _round_up(-(-b8 // 2), 8))   # ceil(b8/2) -> mult of 8
    tb = min(batch_tile, b8, two_step_cap) if b8 > 8 else 8
    Bp = _round_up(B, tb)
    if Bp != B:
        x = jnp.pad(x, ((0, Bp - B), (0, 0)))

    grid = (Bp // tb,)
    # Weights / biases are tiny (~28 KB) and fully resident every step.
    resident = lambda shape: pl.BlockSpec(shape, lambda i: (0, 0))

    out = pl.pallas_call(
        _ffnn_kernel,
        out_shape=jax.ShapeDtypeStruct((Bp, out_size), jnp.float32),
        grid_spec=pltpu.PrefetchScalarGridSpec(
            num_scalar_prefetch=0,
            grid=grid,
            in_specs=[
                pl.BlockSpec((tb, in_size), lambda i: (i, 0)),
                resident((in_size, hidden)),
                resident((1, hidden)),
                resident((hidden, hidden)),
                resident((1, hidden)),
                resident((hidden, out_size)),
                resident((1, out_size)),
            ],
            out_specs=pl.BlockSpec((tb, out_size), lambda i: (i, 0)),
        ),
        compiler_params=pltpu.CompilerParams(
            dimension_semantics=("parallel",),
        ),
    )(x, w1, b1, w2, b2, w3, b3)

    return out[:B].astype(orig_dtype)


def init_params(key, input_size, hidden_size, output_size, dtype=jnp.float32):
    """Deterministic init mimicking PyTorch Linear's U(-1/sqrt(fan_in), ...)."""
    ks = jax.random.split(key, 6)

    def linear(kw, kb, fan_in, fan_out):
        bound = 1.0 / jnp.sqrt(jnp.asarray(fan_in, dtype))
        # store weight as (in, out)  (transposed vs PyTorch's (out, in))
        w = jax.random.uniform(kw, (fan_in, fan_out), dtype, -bound, bound)
        b = jax.random.uniform(kb, (1, fan_out), dtype, -bound, bound)
        return w, b

    w1, b1 = linear(ks[0], ks[1], input_size, hidden_size)
    w2, b2 = linear(ks[2], ks[3], hidden_size, hidden_size)
    w3, b3 = linear(ks[4], ks[5], hidden_size, output_size)
    return w1, b1, w2, b2, w3, b3


def ffnn_reference(x, w1, b1, w2, b2, w3, b3):
    """Pure-JAX reference with matching numerics (bf16 MXU inputs, f32 accum)."""
    bf16 = jnp.bfloat16

    def lin(a, w, b):
        return jnp.dot(a.astype(bf16), w.astype(bf16),
                       preferred_element_type=jnp.float32) + b

    h1 = jnp.maximum(lin(x, w1, b1), 0.0)
    h2 = jnp.maximum(lin(h1, w2, b2), 0.0)
    return jax.nn.softmax(lin(h2, w3, b3), axis=1)


if __name__ == "__main__":
    input_size, hidden_size, output_size = 32, 64, 16
    batch = 8

    key = jax.random.PRNGKey(0)
    kx, kp = jax.random.split(key)
    x = jax.random.normal(kx, (batch, input_size), dtype=jnp.float32)
    params = init_params(kp, input_size, hidden_size, output_size)

    # single-tile path (small batch)
    out = ffnn_forward(x, *params)
    out = jax.block_until_ready(out)
    ref = ffnn_reference(x, *params)
    assert out.shape == (batch, output_size)
    assert jnp.allclose(out, ref, atol=2e-4, rtol=2e-4), "mismatch vs reference"
    assert jnp.allclose(jnp.sum(out, axis=1), 1.0, atol=1e-5)

    # multi-step grid + batch-padding path (batch not a tile multiple)
    x2 = jax.random.normal(jax.random.PRNGKey(1), (40, input_size), jnp.float32)
    out2 = jax.block_until_ready(ffnn_forward(x2, *params, batch_tile=16))
    ref2 = ffnn_reference(x2, *params)
    assert out2.shape == (40, output_size)
    assert jnp.allclose(out2, ref2, atol=2e-4, rtol=2e-4), "mismatch (tiled path)"
    assert jnp.allclose(jnp.sum(out2, axis=1), 1.0, atol=1e-5)

    print("KERNEL_OK")
</pallas_src>

<mosaic_0001>
module attributes {stable_mosaic.version = 11 : i64} {
  func.func @_ffnn_kernel(%arg0: i32, %arg1: memref<8x32xf32, #tpu.memory_space<vmem>>, %arg2: memref<32x64xf32, #tpu.memory_space<vmem>>, %arg3: memref<1x64xf32, #tpu.memory_space<vmem>>, %arg4: memref<64x64xf32, #tpu.memory_space<vmem>>, %arg5: memref<1x64xf32, #tpu.memory_space<vmem>>, %arg6: memref<64x16xf32, #tpu.memory_space<vmem>>, %arg7: memref<1x16xf32, #tpu.memory_space<vmem>>, %arg8: memref<8x16xf32, #tpu.memory_space<vmem>>) attributes {dimension_semantics = [#tpu.dimension_semantics<parallel>], iteration_bounds = array<i64: 1>, scalar_prefetch = 0 : i64, scratch_operands = 0 : i64, tpu.core_type = #tpu.core_type<tc>, window_params = [{transform_indices = @transform_0, window_bounds = array<i64: 8, 32>}, {pipeline_mode = #tpu.pipeline_mode<synchronous>, transform_indices = @transform_1, window_bounds = array<i64: 32, 64>}, {pipeline_mode = #tpu.pipeline_mode<synchronous>, transform_indices = @transform_2, window_bounds = array<i64: 1, 64>}, {pipeline_mode = #tpu.pipeline_mode<synchronous>, transform_indices = @transform_3, window_bounds = array<i64: 64, 64>}, {pipeline_mode = #tpu.pipeline_mode<synchronous>, transform_indices = @transform_4, window_bounds = array<i64: 1, 64>}, {pipeline_mode = #tpu.pipeline_mode<synchronous>, transform_indices = @transform_5, window_bounds = array<i64: 64, 16>}, {pipeline_mode = #tpu.pipeline_mode<synchronous>, transform_indices = @transform_6, window_bounds = array<i64: 1, 16>}, {transform_indices = @transform_7, window_bounds = array<i64: 8, 16>}]} {
    %c0 = arith.constant 0 : index
    %c0_0 = arith.constant 0 : index
    %0 = vector.load %arg1[%c0, %c0_0] : memref<8x32xf32, #tpu.memory_space<vmem>>, vector<8x32xf32>
    %1 = arith.truncf %0 : vector<8x32xf32> to vector<8x32xbf16>
    %c0_1 = arith.constant 0 : index
    %c0_2 = arith.constant 0 : index
    %2 = vector.load %arg2[%c0_1, %c0_2] : memref<32x64xf32, #tpu.memory_space<vmem>>, vector<32x64xf32>
    %3 = arith.truncf %2 : vector<32x64xf32> to vector<32x64xbf16>
    %cst = arith.constant dense<0.000000e+00> : vector<8x64xf32>
    %4 = tpu.matmul %1, %3, %cst {dimension_numbers = #tpu.dot_dimension_numbers<[1], [0], [0], [1], [0, 0, 1, 1], [], []>} : vector<8x32xbf16>, vector<32x64xbf16>, vector<8x64xf32> -> vector<8x64xf32>
    %c0_3 = arith.constant 0 : index
    %c0_4 = arith.constant 0 : index
    %5 = vector.load %arg3[%c0_3, %c0_4] : memref<1x64xf32, #tpu.memory_space<vmem>>, vector<1x64xf32>
    %6 = vector.broadcast %5 : vector<1x64xf32> to vector<8x64xf32>
    %7 = arith.addf %4, %6 : vector<8x64xf32>
    %cst_5 = arith.constant 0.000000e+00 : f32
    %8 = vector.broadcast %cst_5 : f32 to vector<8x64xf32>
    %9 = arith.maximumf %7, %8 : vector<8x64xf32>
    %10 = arith.truncf %9 : vector<8x64xf32> to vector<8x64xbf16>
    %c0_6 = arith.constant 0 : index
    %c0_7 = arith.constant 0 : index
    %11 = vector.load %arg4[%c0_6, %c0_7] : memref<64x64xf32, #tpu.memory_space<vmem>>, vector<64x64xf32>
    %12 = arith.truncf %11 : vector<64x64xf32> to vector<64x64xbf16>
    %cst_8 = arith.constant dense<0.000000e+00> : vector<8x64xf32>
    %13 = tpu.matmul %10, %12, %cst_8 {dimension_numbers = #tpu.dot_dimension_numbers<[1], [0], [0], [1], [0, 0, 1, 1], [], []>} : vector<8x64xbf16>, vector<64x64xbf16>, vector<8x64xf32> -> vector<8x64xf32>
    %c0_9 = arith.constant 0 : index
    %c0_10 = arith.constant 0 : index
    %14 = vector.load %arg5[%c0_9, %c0_10] : memref<1x64xf32, #tpu.memory_space<vmem>>, vector<1x64xf32>
    %15 = vector.broadcast %14 : vector<1x64xf32> to vector<8x64xf32>
    %16 = arith.addf %13, %15 : vector<8x64xf32>
    %cst_11 = arith.constant 0.000000e+00 : f32
    %17 = vector.broadcast %cst_11 : f32 to vector<8x64xf32>
    %18 = arith.maximumf %16, %17 : vector<8x64xf32>
    %19 = arith.truncf %18 : vector<8x64xf32> to vector<8x64xbf16>
    %c0_12 = arith.constant 0 : index
    %c0_13 = arith.constant 0 : index
    %20 = vector.load %arg6[%c0_12, %c0_13] : memref<64x16xf32, #tpu.memory_space<vmem>>, vector<64x16xf32>
    %21 = arith.truncf %20 : vector<64x16xf32> to vector<64x16xbf16>
    %cst_14 = arith.constant dense<0.000000e+00> : vector<8x16xf32>
    %22 = tpu.matmul %19, %21, %cst_14 {dimension_numbers = #tpu.dot_dimension_numbers<[1], [0], [0], [1], [0, 0, 1, 1], [], []>} : vector<8x64xbf16>, vector<64x16xbf16>, vector<8x16xf32> -> vector<8x16xf32>
    %c0_15 = arith.constant 0 : index
    %c0_16 = arith.constant 0 : index
    %23 = vector.load %arg7[%c0_15, %c0_16] : memref<1x16xf32, #tpu.memory_space<vmem>>, vector<1x16xf32>
    %24 = vector.broadcast %23 : vector<1x16xf32> to vector<8x16xf32>
    %25 = arith.addf %22, %24 : vector<8x16xf32>
    %cst_17 = arith.constant dense<0xFF800000> : vector<8xf32>
    %26 = vector.multi_reduction <maximumf>, %25, %cst_17 [1] : vector<8x16xf32> to vector<8xf32>
    %27 = vector.shape_cast %26 : vector<8xf32> to vector<8x1xf32>
    %28 = vector.broadcast %27 : vector<8x1xf32> to vector<8x16xf32>
    %29 = arith.subf %25, %28 : vector<8x16xf32>
    %30 = math.exp %29 : vector<8x16xf32>
    %cst_18 = arith.constant dense<0.000000e+00> : vector<8xf32>
    %31 = vector.multi_reduction <add>, %30, %cst_18 [1] : vector<8x16xf32> to vector<8xf32>
    %32 = vector.shape_cast %31 : vector<8xf32> to vector<8x1xf32>
    %33 = vector.broadcast %32 : vector<8x1xf32> to vector<8x16xf32>
    %34 = arith.divf %30, %33 : vector<8x16xf32>
    %c0_19 = arith.constant 0 : index
    %c0_20 = arith.constant 0 : index
    %35 = vector.load %arg8[%c0_19, %c0_20] : memref<8x16xf32, #tpu.memory_space<vmem>>, vector<8x16xf32>
    tpu.vector_store %arg8[%c0_19, %c0_20], %34 {strides = array<i32>} : memref<8x16xf32, #tpu.memory_space<vmem>>, vector<8x16xf32>,
    return
  }
  func.func @transform_0(%arg0: i32) -> (i32, i32) {
    %c0_i32 = arith.constant 0 : i32
    %c0_i32_0 = arith.constant 0 : i32
    return %arg0, %c0_i32 : i32, i32
  }
  func.func @transform_1(%arg0: i32) -> (i32, i32) {
    %c0_i32 = arith.constant 0 : i32
    %c0_i32_0 = arith.constant 0 : i32
    %c0_i32_1 = arith.constant 0 : i32
    return %c0_i32, %c0_i32_0 : i32, i32
  }
  func.func @transform_2(%arg0: i32) -> (i32, i32) {
    %c0_i32 = arith.constant 0 : i32
    %c0_i32_0 = arith.constant 0 : i32
    %c0_i32_1 = arith.constant 0 : i32
    return %c0_i32, %c0_i32_0 : i32, i32
  }
  func.func @transform_3(%arg0: i32) -> (i32, i32) {
    %c0_i32 = arith.constant 0 : i32
    %c0_i32_0 = arith.constant 0 : i32
    %c0_i32_1 = arith.constant 0 : i32
    return %c0_i32, %c0_i32_0 : i32, i32
  }
  func.func @transform_4(%arg0: i32) -> (i32, i32) {
    %c0_i32 = arith.constant 0 : i32
    %c0_i32_0 = arith.constant 0 : i32
    %c0_i32_1 = arith.constant 0 : i32
    return %c0_i32, %c0_i32_0 : i32, i32
  }
  func.func @transform_5(%arg0: i32) -> (i32, i32) {
    %c0_i32 = arith.constant 0 : i32
    %c0_i32_0 = arith.constant 0 : i32
    %c0_i32_1 = arith.constant 0 : i32
    return %c0_i32, %c0_i32_0 : i32, i32
  }
  func.func @transform_6(%arg0: i32) -> (i32, i32) {
    %c0_i32 = arith.constant 0 : i32
    %c0_i32_0 = arith.constant 0 : i32
    %c0_i32_1 = arith.constant 0 : i32
    return %c0_i32, %c0_i32_0 : i32, i32
  }
  func.func @transform_7(%arg0: i32) -> (i32, i32) {
    %c0_i32 = arith.constant 0 : i32
    %c0_i32_0 = arith.constant 0 : i32
    return %arg0, %c0_i32 : i32, i32
  }
}

</mosaic_0001>

<bundles_post_ra>
// kernel: ffnn_forward.1
= control target key start
LH: loop header
LB: loop body
LE: loop exit
PB: predicated region body
PF: predicated region fallthrough
CT: control target
= control target key end

     0   :  { %12 = vsyncpa [#allocation3], 0  ;;  %s496_s0 = inlined_call_operand.vmem [shape: f32[8,32], index: 0, kind: input, shape index: {}]   ;;  %s497_s1 = inlined_call_operand.hbm [shape: f32[32,64], index: 1, kind: input, shape index: {}]   ;;  %s498_s2 = inlined_call_operand.vmem [shape: f32[1,64], index: 2, kind: input, shape index: {}]   ;;  %s499_s3 = inlined_call_operand.vmem [shape: f32[64,64], index: 3, kind: input, shape index: {}]   ;;  %s500_s4 = inlined_call_operand.vmem [shape: f32[1,64], index: 4, kind: input, shape index: {}]   ;;  %s501_s5 = inlined_call_operand.vmem [shape: f32[64,16], index: 5, kind: input, shape index: {}]   ;;  %s502_s6 = inlined_call_operand.vmem [shape: f32[1,16], index: 6, kind: input, shape index: {}]   ;;  %s503_s7 = inlined_call_operand.hbm [shape: f32[8,16], index: 7, kind: output, shape index: {}]  }
   0x1   :  { %13 = vsyncpa [#allocation4], 0  ;;  %s363_s24 = smov [#allocation2]  }
   0x2   :  { %s21_s25 = sshll.u32 %s363_s24, 4  ;;  %s22_s25 = int_to_ptr.vmem [resolvable:$true] %s21_s25 }
   0x3   :  { %s327_s26 = scalar_lea.vmem %s22_s25, 512  ;;  %p332_p1 = scmp.lt.s32.totalorder %s22_s25, %s22_s25 }
   0x4   :  { %p328_p0 = scmp.ne.s32.totalorder %s22_s25, %s327_s26  ;;  %p333_p2 = scmp.lt.s32.totalorder %s327_s26, %s327_s26 }
   0x6   :  { %p334_p3 = por %p333_p2, %p332_p1 }
   0x8   :  { %p335_p4 = pnand %p334_p3, %p328_p0 }
   0xa   :  { %338 = shalt.err (!%p335_p4)
}
   0xb   :  { %s364_s27 = smov 128   ;;  %s365_s28 = smov 8  }
   0xc   :  { %27 = dma.hbm_to_vmem [thread:$0]  %s497_s1, 512, %s22_s25, [#allocation3], %s364_s27, %s364_s27, %s365_s28  }
   0xd   :  { %359 = dma.done.wait [#allocation3], 512  }
   0xe   :  { %360 = vsyncadd [#allocation3], 4294966784  ;;  %v366_v0 = vmov 0.0   ;;  %vm367_vm0 = vmmov 0   ;;  %v46_v1 = vld [vmem:[#allocation2 + $0x10] sm:$0xff]  ;;  %v47_v2 = vld [vmem:[#allocation2 + $0x18] sm:$0xff] }
   0xf   :  { %277 = vmatprep.subr.bf16.mxu0 %v366_v0  ;;  %281 = vmatprep.mubr.msk.bf16.mxu0 %vm367_vm0, %v366_v0  ;;  %v44_v3 = vld [vmem:[#allocation2] sm:$0xff]  ;;  %v49_v4 = vpack.c.bf16 %v47_v2, %v46_v1  ;;  %v45_v5 = vld [vmem:[#allocation2 + $0x8] sm:$0xff]  ;;  %v109_v6 = vld [vmem:[%s499_s3 + $0x30] sm:$0xff]  ;;  %vm57_vm1 = vcmask 261120   ;;  %vm122_vm2 = vcmask 523264   ;;  %vm230_vm3 = vcmask 130048  }
  0x10   :  { %285 = vmatprep.subr.bf16.mxu1 %v366_v0  ;;  %293 = vmatprep.mubr.msk.bf16.mxu1 %vm367_vm0, %v366_v0  ;;  %v110_v7 = vld [vmem:[%s499_s3 + $0x38] sm:$0xff]  ;;  %v107_v8 = vld [vmem:[%s499_s3 + $0x20] sm:$0xff]  ;;  %v108_v9 = vld [vmem:[%s499_s3 + $0x28] sm:$0xff]  ;;  %v48_v10 = vpack.c.bf16 %v45_v5, %v44_v3 }
  0x11   :  { %278 = vmatpush3.bf16.msra.mxu0 %v49_v4  ;;  %v42_v11 = vld [vmem:[%s496_s0] sm:$0xff]  ;;  %v114_v12 = vpack.c.bf16 %v110_v7, %v109_v6  ;;  %v113_v13 = vpack.c.bf16 %v108_v9, %v107_v8  ;;  %v105_v15 = vld [vmem:[%s499_s3 + $0x10] sm:$0xff]  ;;  %v106_v16 = vld [vmem:[%s499_s3 + $0x18] sm:$0xff] }
  0x12   :  { %279 = vmatprep.subr.bf16.mxu0 %v366_v0  ;;  %v43_v14 = vpack.c.bf16 %v42_v11, %v42_v11  ;;  %v112_v17 = vpack.c.bf16 %v106_v16, %v105_v15  ;;  %v103_v18 = vld [vmem:[%s499_s3] sm:$0xff]  ;;  %v104_v19 = vld [vmem:[%s499_s3 + $0x8] sm:$0xff]  ;;  %v174_v21 = vld [vmem:[%s501_s5 + $0x30] sm:$0xff] }
  0x13   :  { %286 = vmatpush3.bf16.msra.mxu1 %v114_v12  ;;  %v111_v20 = vpack.c.bf16 %v104_v19, %v103_v18  ;;  %v175_v22 = vld [vmem:[%s501_s5 + $0x38] sm:$0xff]  ;;  %v172_v23 = vld [vmem:[%s501_s5 + $0x20] sm:$0xff]  ;;  %v173_v25 = vld [vmem:[%s501_s5 + $0x28] sm:$0xff] }
  0x14   :  { %287 = vmatprep.subr.bf16.mxu1 %v366_v0  ;;  %v179_v24 = vpack.c.bf16 %v175_v22, %v174_v21  ;;  %v178_v26 = vpack.c.bf16 %v173_v25, %v172_v23  ;;  %v258_v27 = vld [vmem:[%s498_s2] ss:$0 sm:$0xff]  ;;  %v170_v35 = vld [vmem:[%s501_s5 + $0x10] sm:$0xff]  ;;  %v171_v36 = vld [vmem:[%s501_s5 + $0x18] sm:$0xff] }
  0x15   :  { %280 = vmatpush3.bf16.msra.mxu0 %v48_v10  ;;  %v177_v37 = vpack.c.bf16 %v171_v36, %v170_v35  ;;  %v168_v38 = vld [vmem:[%s501_s5] sm:$0xff]  ;;  %v169_v39 = vld [vmem:[%s501_s5 + $0x8] sm:$0xff] }
  0x16   :  { %297 = vmatprep.subr.bf16.mxu0 %v366_v0  ;;  %v176_v40 = vpack.c.bf16 %v169_v39, %v168_v38  ;;  %v260_v41 = vld [vmem:[%s500_s4] ss:$0 sm:$0xff]  ;;  %s368_s4 = smov [#allocation5]  }
  0x17   :  { %288 = vmatpush3.bf16.msra.mxu1 %v113_v13  ;;  %v262_v49 = vld [vmem:[%s502_s6] ss:$0 sm:$0xff]  ;;  %s249_s5 = sshll.u32 %s368_s4, 4  ;;  %s250_s5 = int_to_ptr.vmem [resolvable:$true] %s249_s5 }
  0x18   :  { %282 = vmatmul.mubr.msk.bf16.vlgmr.msra.gmra.mxu0 %vm57_vm1, %v43_v14  ;;  %289 = vmatprep.subr.bf16.mxu1 %v366_v0  ;;  %s339_s6 = scalar_lea.vmem %s250_s5, 128  ;;  %p344_p6 = scmp.lt.s32.totalorder %s250_s5, %s250_s5 }
  0x19   :  { %305 = vmatprep.mubr.msk.bf16.mxu0 %vm367_vm0, %v366_v0  ;;  %298 = vmatpush3.bf16.msra.mxu0 %v179_v24  ;;  %p340_p5 = scmp.ne.s32.totalorder %s250_s5, %s339_s6  ;;  %p345_p7 = scmp.lt.s32.totalorder %s339_s6, %s339_s6 }
  0x1a   :  { %299 = vmatprep.subr.bf16.mxu0 %v366_v0 }
  0x1b   :  { %290 = vmatpush3.bf16.msra.mxu1 %v112_v17  ;;  %p346_p8 = por %p345_p7, %p344_p6 }
  0x1c   :  { %291 = vmatprep.subr.bf16.mxu1 %v366_v0 }
  0x1d   :  { %300 = vmatpush3.bf16.msra.mxu0 %v178_v26  ;;  %p347_p9 = pnand %p346_p8, %p340_p5 }
  0x1e   :  { %301 = vmatprep.subr.bf16.mxu0 %v366_v0 }
  0x1f   :  { %292 = vmatpush3.bf16.msra.mxu1 %v111_v20 }
  0x21   :  { %302 = vmatpush3.bf16.msra.mxu0 %v177_v37 }
  0x22   :  { %303 = vmatprep.subr.bf16.mxu0 %v366_v0 }
  0x25   :  { %304 = vmatpush3.bf16.msra.mxu0 %v176_v40 }
  0xd8   :  { %v95_v28 = vpop.f32.mrf.mxu0 }
  0xd9   :  { %v96_v29 = vadd.f32 %v258_v27, %v95_v28 }
  0xda   :  { %v283_v30 = vpop.f32.mrf.mxu0 }
  0xdb   :  { %v101_v31 = vmax.f32 %v96_v29, 0.0 }
  0xdc   :  { %v98_v32 = vpop.f32.mrf.mxu0 }
  0xdd   :  { %v102_v33 = vpack.c.bf16 %v101_v31, %v101_v31 }
  0xde   :  { %v284_v34 = vpop.f32.mrf.mxu0 }
  0xdf   :  { %294 = vmatmul.mubr.msk.bf16.vlgmr.msra.gmra.mxu1 %vm122_vm2, %v102_v33 }
 0x19f   :  { %v160_v42 = vpop.f32.mrf.mxu1 }
 0x1a0   :  { %v161_v43 = vadd.f32 %v260_v41, %v160_v42 }
 0x1a1   :  { %v295_v44 = vpop.f32.mrf.mxu1 }
 0x1a2   :  { %v166_v45 = vmax.f32 %v161_v43, 0.0 }
 0x1a3   :  { %v163_v46 = vpop.f32.mrf.mxu1 }
 0x1a4   :  { %v167_v47 = vpack.c.bf16 %v166_v45, %v166_v45 }
 0x1a5   :  { %v296_v48 = vpop.f32.mrf.mxu1 }
 0x1a6   :  { %306 = vmatmul.mubr.msk.bf16.vlgmr.msra.gmra.mxu0 %vm122_vm2, %v167_v47 }
 0x266   :  { %v224_v50 = vpop.f32.mrf.mxu0 }
 0x267   :  { %v225_v51 = vadd.f32 %v262_v49, %v224_v50 }
 0x268   :  { %v307_v52 = vpop.f32.mrf.mxu0 }
 0x269   :  { %v231_v53 = vsel %vm230_vm3, %v225_v51, -inf }
 0x26a   :  { %232 = vmax.xlane.f32.xlu0 %v231_v53  ;;  %v227_v54 = vpop.f32.mrf.mxu0 }
 0x26c   :  { %v308_v55 = vpop.f32.mrf.mxu0 }
 0x2f3   :  { %v233_v56 = vpop.xlane.xlu0 %232 }
 0x2f4   :  { %v234_v57 = vsub.f32 %v225_v51, %v233_v56 }
 0x2f6   :  { %v235_v58 = vmul.f32 1.442695, %v234_v57 }
 0x2f8   :  { %315 = vpow2.f32 %v235_v58 }
 0x305   :  { %v316_v59 = vpop.eup %315 }
 0x306   :  { %v237_v60 = vsel %vm230_vm3, %v316_v59, 0.0 }
 0x307   :  { %238 = vadd.xlane.f32.xlu0 %v237_v60 }
 0x390   :  { %v239_v61 = vpop.xlane.xlu0 %238 }
 0x391   :  { %317 = vrcp.f32 %v239_v61 }
 0x39e   :  { %v318_v62 = vpop.eup %317 }
 0x39f   :  { %v241_v63 = vmul.f32 %v318_v62, %v316_v59 }
 0x3a1   :  { %242 = vst.msk [vmem:[#allocation5] sm:$0xff] %vm230_vm3, %v241_v63 }
 0x3a2   :  { %350 = shalt.err (!%p347_p9)
}
 0x3a3   :  { %252 = dma.vmem_to_hbm [thread:$0]  %s250_s5, 128, %s503_s7, [#allocation4]  }
 0x3a4   :  { %361 = dma.done.wait [#allocation4], 128  }
 0x3a5   :  { %362 = vsyncadd [#allocation4], 4294967168 }
 0x3a6   :  { %256 = vsyncpa [#allocation3], 1 }
 0x3a7   :  { %257 = vsyncpa [#allocation4], 1 }

</bundles_post_ra>
